<compile_context>
chip_gen: v7x
topology: tpu7x:2x2x1
jax: 0.10.0
libtpu: 0.0.40
codegen_flags: <defaults>
</compile_context>

<pallas_src>
import functools
from typing import NamedTuple

import jax
import jax.numpy as jnp
from jax.experimental import pallas as pl
from jax.experimental.pallas import tpu as pltpu

_LANE = 128
_BATCH_ALIGN = 16   # bf16 packs two rows per sublane -> keep row tiles %16


def _round_up(x, m):
    return (x + m - 1) // m * m


# ---------------------------------------------------------------------------
# Kernel
# ---------------------------------------------------------------------------
def _mlp_cond_kernel(xy_ref, t_ref,
                     w1xy_ref, w1t_ref, b1_ref,
                     w2_ref, b2_ref,
                     w3_ref, b3_ref,
                     o_ref):
    f32 = jnp.float32
    # ---- Layer 1: fused concat([x, y]) @ W1_xy (single MXU pass) -----------
    h = jnp.dot(xy_ref[...], w1xy_ref[...], preferred_element_type=f32)
    # t is a single feature: rank-1 f32 broadcast multiply on the VPU.
    h = h + t_ref[...] * w1t_ref[...]
    h = jnp.maximum(h + b1_ref[...], 0.0)
    # ---- Layer 2: Linear + ReLU ---------------------------------------------
    h = jnp.dot(h.astype(w2_ref.dtype), w2_ref[...], preferred_element_type=f32)
    h = jnp.maximum(h + b2_ref[...], 0.0)
    # ---- Output layer: Linear -----------------------------------------------
    out = jnp.dot(h.astype(w3_ref.dtype), w3_ref[...], preferred_element_type=f32)
    out = out + b3_ref[...]
    o_ref[...] = out.astype(o_ref.dtype)


# ---------------------------------------------------------------------------
# One-time parameter preparation (hoisted out of the forward path)
# ---------------------------------------------------------------------------
class PreparedParams(NamedTuple):
    w1xy: jax.Array   # [dim+ydim, h1p]  compute dtype
    w1t: jax.Array    # [1, h1p]         f32
    b1: jax.Array     # [1, h1p]         f32
    w2: jax.Array     # [h1p, h2p]       compute dtype
    b2: jax.Array     # [1, h2p]         f32
    w3: jax.Array     # [h2p, dp]        compute dtype
    b3: jax.Array     # [1, dp]          f32


class MLPCondDims(NamedTuple):   # hashable -> usable as a jit static arg
    dim: int
    ydim: int
    h1: int
    h2: int
    out_dim: int


def prepare_params(params, dim, *, compute_dtype=jnp.bfloat16):
    """Pad / split / cast the weights once. Zero padding is numerically exact."""
    w1, b1, w2, b2, w3, b3 = params
    in_dim, h1 = w1.shape
    ydim = in_dim - dim - 1
    h2 = w2.shape[1]
    out_dim = w3.shape[1]
    h1p = _round_up(h1, _LANE)
    h2p = _round_up(h2, _LANE)
    dp = _round_up(out_dim, _LANE)

    def pad2(a, rows, cols, dtype):
        return jnp.pad(a, ((0, rows - a.shape[0]),
                           (0, cols - a.shape[1]))).astype(dtype)

    # Merge the x and y row-blocks of W1 (drop the single t row -> f32 VPU path).
    w1xy = jnp.concatenate([w1[:dim], w1[dim + 1:]], axis=0)     # [dim+ydim, h1]

    prep = PreparedParams(
        w1xy=pad2(w1xy, dim + ydim, h1p, compute_dtype),
        w1t=pad2(w1[dim:dim + 1], 1, h1p, jnp.float32),
        b1=pad2(b1, 1, h1p, jnp.float32),
        w2=pad2(w2, h1p, h2p, compute_dtype),
        b2=pad2(b2, 1, h2p, jnp.float32),
        w3=pad2(w3, h2p, dp, compute_dtype),
        b3=pad2(b3, 1, dp, jnp.float32),
    )
    dims = MLPCondDims(dim=dim, ydim=ydim, h1=h1, h2=h2, out_dim=out_dim)
    return prep, dims


def _default_target_steps():
    # v7x has 2 TensorCores per chip -> keep >=2 "parallel" grid steps;
    # v5e / v6e have a single TC -> one big step amortizes pipeline overhead.
    try:
        kind = jax.devices()[0].device_kind.lower()
    except Exception:
        return 1
    return 2 if "v7" in kind else 1


def pick_block_batch(n, *, target_steps=None, max_bm=512):
    if target_steps is None:
        target_steps = _default_target_steps()
    n_aligned = _round_up(n, _BATCH_ALIGN)
    bm = _round_up(-(-n_aligned // target_steps), _BATCH_ALIGN)
    return min(max_bm, bm)


# ---------------------------------------------------------------------------
# Forward (jit'd so activation pads / the unpad slice live in one executable)
# ---------------------------------------------------------------------------
@functools.partial(jax.jit,
                   static_argnames=("dims", "block_batch", "compute_dtype",
                                    "out_dtype"))
def mlp_cond_forward(x, t, y, prep, *, dims, block_batch=256,
                     compute_dtype=jnp.bfloat16, out_dtype=jnp.bfloat16):
    """x: [N, dim], t: [N], y: [N, ydim] -> [N, dim]  (MLPCond.forward)."""
    n, dim = x.shape
    ydim = y.shape[1]
    assert dim == dims.dim and ydim == dims.ydim
    xin = dim + ydim
    h1p = prep.w1xy.shape[1]
    h2p = prep.w2.shape[1]
    dp = prep.w3.shape[1]

    # Batch tile: multiple of 16 rows, capped by block_batch; pad batch to a
    # whole number of tiles.
    bm = _round_up(min(block_batch, _round_up(n, _BATCH_ALIGN)), _BATCH_ALIGN)
    n_pad = _round_up(n, bm)

    xy = jnp.concatenate([x, y], axis=-1).astype(compute_dtype)
    xy = jnp.pad(xy, ((0, n_pad - n), (0, 0)))
    t_p = jnp.pad(t[:, None].astype(jnp.float32), ((0, n_pad - n), (0, 0)))

    grid = (n_pad // bm,)

    def row_map(i):
        return (i, 0)

    def const_map(i):
        # Constant index_map: weights DMA'd once, never refetched across steps.
        return (0, 0)

    def w_spec(shape):
        return pl.BlockSpec(shape, const_map)

    # Honest cost estimate (true, unpadded dims) — advisory for XLA scheduling.
    flops = 2 * n * (xin * dims.h1 + dims.h1 * dims.h2 + dims.h2 * dims.out_dim)
    bytes_accessed = (xy.size * xy.dtype.itemsize + t_p.size * 4
                      + sum(int(a.size) * a.dtype.itemsize for a in prep)
                      + n_pad * dims.out_dim * jnp.dtype(out_dtype).itemsize)
    cost = pl.CostEstimate(flops=int(flops), transcendentals=0,
                           bytes_accessed=int(bytes_accessed))

    out = pl.pallas_call(
        _mlp_cond_kernel,
        out_shape=jax.ShapeDtypeStruct((n_pad, dp), out_dtype),
        grid_spec=pltpu.PrefetchScalarGridSpec(
            num_scalar_prefetch=0,
            grid=grid,
            in_specs=[
                pl.BlockSpec((bm, xin), row_map),   # fused [x, y] tile
                pl.BlockSpec((bm, 1), row_map),     # t tile (f32)
                w_spec((xin, h1p)),                 # w1_xy
                w_spec((1, h1p)),                   # w1_t
                w_spec((1, h1p)),                   # b1
                w_spec((h1p, h2p)),                 # w2
                w_spec((1, h2p)),                   # b2
                w_spec((h2p, dp)),                  # w3
                w_spec((1, dp)),                    # b3
            ],
            out_specs=pl.BlockSpec((bm, dp), row_map),  # lane-dense output slab
        ),
        compiler_params=pltpu.CompilerParams(
            dimension_semantics=("parallel",)),
        cost_estimate=cost,
    )(xy, t_p, prep.w1xy, prep.w1t, prep.b1, prep.w2, prep.b2, prep.w3, prep.b3)

    return out[:n, :dims.out_dim]


# ---------------------------------------------------------------------------
# Init + references
# ---------------------------------------------------------------------------
def init_params(key, dim, ydim, hidden_dims):
    """Deterministic init mimicking nn.Linear shapes (stored as [in, out])."""
    in_dim = dim + 1 + ydim
    dims = [in_dim] + list(hidden_dims) + [dim]
    params = []
    for i in range(len(dims) - 1):
        k_w, k_b, key = jax.random.split(key, 3)
        fan_in = dims[i]
        bound = 1.0 / jnp.sqrt(fan_in)
        w = jax.random.uniform(k_w, (dims[i], dims[i + 1]),
                               minval=-bound, maxval=bound, dtype=jnp.float32)
        b = jax.random.uniform(k_b, (1, dims[i + 1]),
                               minval=-bound, maxval=bound, dtype=jnp.float32)
        params.extend([w, b])
    return tuple(params)


def reference_forward(x, t, y, params):
    """Plain-JAX f32 reference matching the PyTorch module semantics."""
    w1, b1, w2, b2, w3, b3 = params
    h = jnp.concatenate([x, t[..., None], y], axis=-1)
    h = jnp.maximum(h @ w1 + b1, 0.0)
    h = jnp.maximum(h @ w2 + b2, 0.0)
    return h @ w3 + b3


def reference_forward_compute_dtype(x, t, y, params,
                                    compute_dtype=jnp.bfloat16,
                                    out_dtype=jnp.bfloat16):
    """Reference mirroring the kernel's bf16-input / f32-accumulate math."""
    w1, b1, w2, b2, w3, b3 = params
    dim = x.shape[1]
    c = compute_dtype

    def mm(a, b):
        return jnp.dot(a.astype(c), b.astype(c),
                       preferred_element_type=jnp.float32)

    w1xy = jnp.concatenate([w1[:dim], w1[dim + 1:]], axis=0)
    xy = jnp.concatenate([x, y], axis=-1)
    h = mm(xy, w1xy) + t[:, None] * w1[dim:dim + 1] + b1
    h = jnp.maximum(h, 0.0)
    h = jnp.maximum(mm(h, w2) + b2, 0.0)
    return (mm(h, w3) + b3).astype(out_dtype)


if __name__ == "__main__":
    # Shapes consistent with the module's forward:
    #   x: [nbatch, dim], t: [nbatch], y: [nbatch, ydim]
    nbatch, dim, ydim = 256, 16, 4
    hidden_dims = [32, 32]          # two hidden layers, ReLU, dropout=0.0

    key = jax.random.PRNGKey(0)
    kx, kt, ky, kp = jax.random.split(key, 4)
    x = jax.random.normal(kx, (nbatch, dim), dtype=jnp.float32)
    t = jax.random.uniform(kt, (nbatch,), dtype=jnp.float32)
    y = jax.random.normal(ky, (nbatch, ydim), dtype=jnp.float32)

    params = init_params(kp, dim, ydim, hidden_dims)

    # One-time prep: padding/splitting/casting of weights is NOT on the
    # per-call forward path.
    prep, dims = prepare_params(params, dim)
    prep = jax.block_until_ready(prep)

    # bm per chip generation: 1 big step on single-TC v5e/v6e, 2 parallel
    # steps on dual-TC v7x.
    block_batch = pick_block_batch(nbatch)

    out = mlp_cond_forward(x, t, y, prep, dims=dims, block_batch=block_batch)
    out = jax.block_until_ready(out)
    assert out.shape == (nbatch, dim)

    # Tight check vs a reference mirroring the kernel's bf16/f32 math (and its
    # bf16 output rounding), plus a loose check vs the pure-f32 module
    # semantics (expected precision change from bf16 MXU inputs, not a bug).
    ref_emu = reference_forward_compute_dtype(x, t, y, params,
                                              out_dtype=out.dtype)
    assert jnp.allclose(out.astype(jnp.float32), ref_emu.astype(jnp.float32),
                        atol=1e-2, rtol=1e-2), "mismatch vs bf16-emulated reference"
    ref = reference_forward(x, t, y, params)
    assert jnp.allclose(out.astype(jnp.float32), ref,
                        atol=8e-2, rtol=8e-2), "mismatch vs f32 reference"

    print("KERNEL_OK")
</pallas_src>

<mosaic_0001>
module attributes {stable_mosaic.version = 11 : i64} {
  func.func @_mlp_cond_kernel(%arg0: i32, %arg1: memref<256x20xbf16, #tpu.memory_space<vmem>>, %arg2: memref<256x1xf32, #tpu.memory_space<vmem>>, %arg3: memref<20x128xbf16, #tpu.memory_space<vmem>>, %arg4: memref<1x128xf32, #tpu.memory_space<vmem>>, %arg5: memref<1x128xf32, #tpu.memory_space<vmem>>, %arg6: memref<128x128xbf16, #tpu.memory_space<vmem>>, %arg7: memref<1x128xf32, #tpu.memory_space<vmem>>, %arg8: memref<128x128xbf16, #tpu.memory_space<vmem>>, %arg9: memref<1x128xf32, #tpu.memory_space<vmem>>, %arg10: memref<256x128xbf16, #tpu.memory_space<vmem>>) attributes {dimension_semantics = [#tpu.dimension_semantics<parallel>], iteration_bounds = array<i64: 1>, scalar_prefetch = 0 : i64, scratch_operands = 0 : i64, tpu.core_type = #tpu.core_type<tc>, window_params = [{transform_indices = @transform_0, window_bounds = array<i64: 256, 20>}, {transform_indices = @transform_1, window_bounds = array<i64: 256, 1>}, {pipeline_mode = #tpu.pipeline_mode<synchronous>, transform_indices = @transform_2, window_bounds = array<i64: 20, 128>}, {pipeline_mode = #tpu.pipeline_mode<synchronous>, transform_indices = @transform_3, window_bounds = array<i64: 1, 128>}, {pipeline_mode = #tpu.pipeline_mode<synchronous>, transform_indices = @transform_4, window_bounds = array<i64: 1, 128>}, {pipeline_mode = #tpu.pipeline_mode<synchronous>, transform_indices = @transform_5, window_bounds = array<i64: 128, 128>}, {pipeline_mode = #tpu.pipeline_mode<synchronous>, transform_indices = @transform_6, window_bounds = array<i64: 1, 128>}, {pipeline_mode = #tpu.pipeline_mode<synchronous>, transform_indices = @transform_7, window_bounds = array<i64: 128, 128>}, {pipeline_mode = #tpu.pipeline_mode<synchronous>, transform_indices = @transform_8, window_bounds = array<i64: 1, 128>}, {transform_indices = @transform_9, window_bounds = array<i64: 256, 128>}]} {
    %c0 = arith.constant 0 : index
    %c0_0 = arith.constant 0 : index
    %0 = vector.load %arg1[%c0, %c0_0] : memref<256x20xbf16, #tpu.memory_space<vmem>>, vector<256x20xbf16>
    %c0_1 = arith.constant 0 : index
    %c0_2 = arith.constant 0 : index
    %1 = vector.load %arg3[%c0_1, %c0_2] : memref<20x128xbf16, #tpu.memory_space<vmem>>, vector<20x128xbf16>
    %cst = arith.constant dense<0.000000e+00> : vector<256x128xf32>
    %2 = tpu.matmul %0, %1, %cst {dimension_numbers = #tpu.dot_dimension_numbers<[1], [0], [0], [1], [0, 0, 1, 1], [], []>} : vector<256x20xbf16>, vector<20x128xbf16>, vector<256x128xf32> -> vector<256x128xf32>
    %c0_3 = arith.constant 0 : index
    %c0_4 = arith.constant 0 : index
    %3 = vector.load %arg2[%c0_3, %c0_4] : memref<256x1xf32, #tpu.memory_space<vmem>>, vector<256x1xf32>
    %c0_5 = arith.constant 0 : index
    %c0_6 = arith.constant 0 : index
    %4 = vector.load %arg4[%c0_5, %c0_6] : memref<1x128xf32, #tpu.memory_space<vmem>>, vector<1x128xf32>
    %5 = vector.broadcast %3 : vector<256x1xf32> to vector<256x128xf32>
    %6 = vector.broadcast %4 : vector<1x128xf32> to vector<256x128xf32>
    %7 = arith.mulf %5, %6 : vector<256x128xf32>
    %8 = arith.addf %2, %7 : vector<256x128xf32>
    %c0_7 = arith.constant 0 : index
    %c0_8 = arith.constant 0 : index
    %9 = vector.load %arg5[%c0_7, %c0_8] : memref<1x128xf32, #tpu.memory_space<vmem>>, vector<1x128xf32>
    %10 = vector.broadcast %9 : vector<1x128xf32> to vector<256x128xf32>
    %11 = arith.addf %8, %10 : vector<256x128xf32>
    %cst_9 = arith.constant 0.000000e+00 : f32
    %12 = vector.broadcast %cst_9 : f32 to vector<256x128xf32>
    %13 = arith.maximumf %11, %12 : vector<256x128xf32>
    %14 = arith.truncf %13 : vector<256x128xf32> to vector<256x128xbf16>
    %c0_10 = arith.constant 0 : index
    %c0_11 = arith.constant 0 : index
    %15 = vector.load %arg6[%c0_10, %c0_11] : memref<128x128xbf16, #tpu.memory_space<vmem>>, vector<128x128xbf16>
    %cst_12 = arith.constant dense<0.000000e+00> : vector<256x128xf32>
    %16 = tpu.matmul %14, %15, %cst_12 {dimension_numbers = #tpu.dot_dimension_numbers<[1], [0], [0], [1], [0, 0, 1, 1], [], []>} : vector<256x128xbf16>, vector<128x128xbf16>, vector<256x128xf32> -> vector<256x128xf32>
    %c0_13 = arith.constant 0 : index
    %c0_14 = arith.constant 0 : index
    %17 = vector.load %arg7[%c0_13, %c0_14] : memref<1x128xf32, #tpu.memory_space<vmem>>, vector<1x128xf32>
    %18 = vector.broadcast %17 : vector<1x128xf32> to vector<256x128xf32>
    %19 = arith.addf %16, %18 : vector<256x128xf32>
    %cst_15 = arith.constant 0.000000e+00 : f32
    %20 = vector.broadcast %cst_15 : f32 to vector<256x128xf32>
    %21 = arith.maximumf %19, %20 : vector<256x128xf32>
    %22 = arith.truncf %21 : vector<256x128xf32> to vector<256x128xbf16>
    %c0_16 = arith.constant 0 : index
    %c0_17 = arith.constant 0 : index
    %23 = vector.load %arg8[%c0_16, %c0_17] : memref<128x128xbf16, #tpu.memory_space<vmem>>, vector<128x128xbf16>
    %cst_18 = arith.constant dense<0.000000e+00> : vector<256x128xf32>
    %24 = tpu.matmul %22, %23, %cst_18 {dimension_numbers = #tpu.dot_dimension_numbers<[1], [0], [0], [1], [0, 0, 1, 1], [], []>} : vector<256x128xbf16>, vector<128x128xbf16>, vector<256x128xf32> -> vector<256x128xf32>
    %c0_19 = arith.constant 0 : index
    %c0_20 = arith.constant 0 : index
    %25 = vector.load %arg9[%c0_19, %c0_20] : memref<1x128xf32, #tpu.memory_space<vmem>>, vector<1x128xf32>
    %26 = vector.broadcast %25 : vector<1x128xf32> to vector<256x128xf32>
    %27 = arith.addf %24, %26 : vector<256x128xf32>
    %28 = arith.truncf %27 : vector<256x128xf32> to vector<256x128xbf16>
    %c0_21 = arith.constant 0 : index
    %c0_22 = arith.constant 0 : index
    %29 = vector.load %arg10[%c0_21, %c0_22] : memref<256x128xbf16, #tpu.memory_space<vmem>>, vector<256x128xbf16>
    tpu.vector_store %arg10[%c0_21, %c0_22], %28 {strides = array<i32>} : memref<256x128xbf16, #tpu.memory_space<vmem>>, vector<256x128xbf16>,
    return
  }
  func.func @transform_0(%arg0: i32) -> (i32, i32) {
    %c0_i32 = arith.constant 0 : i32
    %c0_i32_0 = arith.constant 0 : i32
    return %arg0, %c0_i32 : i32, i32
  }
  func.func @transform_1(%arg0: i32) -> (i32, i32) {
    %c0_i32 = arith.constant 0 : i32
    %c0_i32_0 = arith.constant 0 : i32
    return %arg0, %c0_i32 : i32, i32
  }
  func.func @transform_2(%arg0: i32) -> (i32, i32) {
    %c0_i32 = arith.constant 0 : i32
    %c0_i32_0 = arith.constant 0 : i32
    %c0_i32_1 = arith.constant 0 : i32
    return %c0_i32, %c0_i32_0 : i32, i32
  }
  func.func @transform_3(%arg0: i32) -> (i32, i32) {
    %c0_i32 = arith.constant 0 : i32
    %c0_i32_0 = arith.constant 0 : i32
    %c0_i32_1 = arith.constant 0 : i32
    return %c0_i32, %c0_i32_0 : i32, i32
  }
  func.func @transform_4(%arg0: i32) -> (i32, i32) {
    %c0_i32 = arith.constant 0 : i32
    %c0_i32_0 = arith.constant 0 : i32
    %c0_i32_1 = arith.constant 0 : i32
    return %c0_i32, %c0_i32_0 : i32, i32
  }
  func.func @transform_5(%arg0: i32) -> (i32, i32) {
    %c0_i32 = arith.constant 0 : i32
    %c0_i32_0 = arith.constant 0 : i32
    %c0_i32_1 = arith.constant 0 : i32
    return %c0_i32, %c0_i32_0 : i32, i32
  }
  func.func @transform_6(%arg0: i32) -> (i32, i32) {
    %c0_i32 = arith.constant 0 : i32
    %c0_i32_0 = arith.constant 0 : i32
    %c0_i32_1 = arith.constant 0 : i32
    return %c0_i32, %c0_i32_0 : i32, i32
  }
  func.func @transform_7(%arg0: i32) -> (i32, i32) {
    %c0_i32 = arith.constant 0 : i32
    %c0_i32_0 = arith.constant 0 : i32
    %c0_i32_1 = arith.constant 0 : i32
    return %c0_i32, %c0_i32_0 : i32, i32
  }
  func.func @transform_8(%arg0: i32) -> (i32, i32) {
    %c0_i32 = arith.constant 0 : i32
    %c0_i32_0 = arith.constant 0 : i32
    %c0_i32_1 = arith.constant 0 : i32
    return %c0_i32, %c0_i32_0 : i32, i32
  }
  func.func @transform_9(%arg0: i32) -> (i32, i32) {
    %c0_i32 = arith.constant 0 : i32
    %c0_i32_0 = arith.constant 0 : i32
    return %arg0, %c0_i32 : i32, i32
  }
}

</mosaic_0001>

<bundles_post_ra>
// kernel: mlp_cond_forward.1
= control target key start
LH: loop header
LB: loop body
LE: loop exit
PB: predicated region body
PF: predicated region fallthrough
CT: control target
= control target key end

     0   :  { %vm437_vm0 = vcmask 1041408   ;;  %vm388_vm1 = vcmask 162816   ;;  %v1819_v1 = vmov 0   ;;  %s2346_s2 = inlined_call_operand.vmem [shape: bf16[20,128], index: 2, kind: input, shape index: {}]   ;;  %s2347_s0 = inlined_call_operand.vmem [shape: bf16[256,20], index: 0, kind: input, shape index: {}]   ;;  %s2348_s1 = inlined_call_operand.vmem [shape: f32[256,1], index: 1, kind: input, shape index: {}]   ;;  %s2349_s5 = inlined_call_operand.vmem [shape: bf16[128,128], index: 5, kind: input, shape index: {}]   ;;  %s2350_s7 = inlined_call_operand.vmem [shape: bf16[128,128], index: 7, kind: input, shape index: {}]   ;;  %s2351_s3 = inlined_call_operand.vmem [shape: f32[1,128], index: 3, kind: input, shape index: {}]   ;;  %s2352_s4 = inlined_call_operand.vmem [shape: f32[1,128], index: 4, kind: input, shape index: {}]   ;;  %s2353_s6 = inlined_call_operand.vmem [shape: f32[1,128], index: 6, kind: input, shape index: {}]   ;;  %s2354_s8 = inlined_call_operand.vmem [shape: f32[1,128], index: 8, kind: input, shape index: {}]   ;;  %s2355_s9 = inlined_call_operand.vmem [shape: bf16[256,128], index: 9, kind: output, shape index: {}]  }
   0x1   :  { %v1785_v0 = vld [vmem:[%s2346_s2] sm:$0xff]   ;;  %1783 = vset.pattern.permute.xlu0 %v1819_v1  ;;  %1784 = vset.pattern.permute.xlu1 %v1819_v1  ;;  %v1786_v2 = vld [vmem:[%s2346_s2 + $0x8] ss:$0 sps:$4 sm:$0x33]   ;;  %v1791_v8 = vld [vmem:[%s2347_s0 + $0x10] sm:$0xff]  }
   0x2   :  { %v1787_v3 = vld [vmem:[%s2347_s0] sm:$0xff]   ;;  %1644 = vmatprep.subr.bf16.mxu0 %v1785_v0  ;;  %1776 = vmatprep.subr.bf16.mxu1 %v1785_v0  ;;  %v439_v5 = vsel %vm437_vm0, %v1786_v2, 0  ;;  %v1789_v6 = vld [vmem:[%s2347_s0 + $0x8] sm:$0xff]   ;;  %v1792_v9 = vld [vmem:[%s2347_s0 + $0x50] sm:$0xff]  }
   0x3   :  { %1645 = vmatpush3.bf16.msra.mxu0 %v1785_v0  ;;  %1778 = vmatpush3.bf16.msra.mxu1 %v1785_v0  ;;  %v1788_v4 = vld [vmem:[%s2347_s0 + $0x40] sm:$0xff]   ;;  %v1790_v7 = vld [vmem:[%s2347_s0 + $0x48] sm:$0xff]   ;;  %v1793_v10 = vld [vmem:[%s2347_s0 + $0x18] sm:$0xff]  }
   0x4   :  { %1780 = vmatprep.subr.msk.bf16.mxu0 %vm437_vm0, %v1786_v2  ;;  %1781 = vmatprep.subr.msk.bf16.mxu1 %vm437_vm0, %v1786_v2  ;;  %v1794_v11 = vld [vmem:[%s2347_s0 + $0x58] sm:$0xff]   ;;  %v1795_v12 = vld [vmem:[%s2347_s0 + $0x20] sm:$0xff]   ;;  %v70_v14 = vld [vmem:[%s2348_s1 + $0x10] sm:$0xff] }
   0x5   :  { %1648 = vmatprep.mubr.msk.bf16.mxu0 %vm388_vm1, %v1787_v3  ;;  %1664 = vmatprep.mubr.msk.bf16.mxu1 %vm388_vm1, %v1788_v4  ;;  %v68_v13 = vld [vmem:[%s2348_s1] sm:$0xff]  ;;  %v69_v16 = vld [vmem:[%s2348_s1 + $0x8] sm:$0xff]  ;;  %v71_v17 = vld [vmem:[%s2348_s1 + $0x18] sm:$0xff] }
   0x6   :  { %103 = vperm.xlu0 %1783, %v68_v13   ;;  %v1796_v15 = vld [vmem:[%s2347_s0 + $0x60] sm:$0xff]   ;;  %113 = vperm.xlu1 %1784, %v70_v14   ;;  %v73_v19 = vld [vmem:[%s2348_s1 + $0x28] sm:$0xff]  ;;  %v1799_v22 = vld [vmem:[%s2347_s0 + $0x30] sm:$0xff]  }
   0x7   :  { %1647 = vmatpush3.bf16.msra.mxu0 %v439_v5  ;;  %1779 = vmatpush3.bf16.msra.mxu1 %v439_v5  ;;  %v72_v18 = vld [vmem:[%s2348_s1 + $0x20] sm:$0xff]  ;;  %v1797_v20 = vld [vmem:[%s2347_s0 + $0x28] sm:$0xff]   ;;  %v1800_v23 = vld [vmem:[%s2347_s0 + $0x70] sm:$0xff]  }
   0x8   :  { %v1798_v21 = vld [vmem:[%s2347_s0 + $0x68] sm:$0xff]   ;;  %v74_v24 = vld [vmem:[%s2348_s1 + $0x30] sm:$0xff]  ;;  %v75_v25 = vld [vmem:[%s2348_s1 + $0x38] sm:$0xff] }
   0x9   :  { %v76_v26 = vld [vmem:[%s2348_s1 + $0x40] sm:$0xff]  ;;  %v77_v27 = vld [vmem:[%s2348_s1 + $0x48] sm:$0xff]  ;;  %v1801_v28 = vld [vmem:[%s2347_s0 + $0x38] sm:$0xff]  }
   0xa   :  { %1649 = vmatmul.mubr.msk.bf16.vlgmr.msra.gmra.mrb[0].mxu0 %vm388_vm1, %v1789_v6  ;;  %1665 = vmatmul.mubr.msk.bf16.vlgmr.msra.gmra.mrb[0].mxu1 %vm388_vm1, %v1790_v7  ;;  %v1802_v29 = vld [vmem:[%s2347_s0 + $0x78] sm:$0xff]   ;;  %v78_v30 = vld [vmem:[%s2348_s1 + $0x50] sm:$0xff]  ;;  %v80_v32 = vld [vmem:[%s2348_s1 + $0x60] sm:$0xff] }
   0xb   :  { %1652 = vmatprep.mubr.msk.bf16.mxu0 %vm388_vm1, %v1791_v8  ;;  %1668 = vmatprep.mubr.msk.bf16.mxu1 %vm388_vm1, %v1792_v9  ;;  %v79_v31 = vld [vmem:[%s2348_s1 + $0x58] sm:$0xff]  ;;  %v81_v33 = vld [vmem:[%s2348_s1 + $0x68] sm:$0xff]  ;;  %v82_v34 = vld [vmem:[%s2348_s1 + $0x70] sm:$0xff] }
   0xc   :  { %108 = vperm.xlu0 %1783, %v69_v16   ;;  %118 = vperm.xlu1 %1784, %v71_v17   ;;  %v83_v35 = vld [vmem:[%s2348_s1 + $0x78] sm:$0xff]  ;;  %v84_v36 = vld [vmem:[%s2348_s1 + $0x80] sm:$0xff]  ;;  %v85_v37 = vld [vmem:[%s2348_s1 + $0x88] sm:$0xff] }
   0xd   :  { %v86_v38 = vld [vmem:[%s2348_s1 + $0x90] sm:$0xff]  ;;  %v87_v39 = vld [vmem:[%s2348_s1 + $0x98] sm:$0xff]  ;;  %v88_v40 = vld [vmem:[%s2348_s1 + $0xa0] sm:$0xff] }
   0xe   :  { %v89_v41 = vld [vmem:[%s2348_s1 + $0xa8] sm:$0xff]  ;;  %v90_v42 = vld [vmem:[%s2348_s1 + $0xb0] sm:$0xff]  ;;  %v91_v43 = vld [vmem:[%s2348_s1 + $0xb8] sm:$0xff] }
   0xf   :  { %v1803_v44 = vld [vmem:[%s2349_s5] sm:$0xff]   ;;  %v93_v46 = vld [vmem:[%s2348_s1 + $0xc8] sm:$0xff]  ;;  %v1805_v48 = vld [vmem:[%s2349_s5 + $0x10] sm:$0xff]  }
  0x10   :  { %123 = vperm.xlu0 %1783, %v72_v18   ;;  %128 = vperm.xlu1 %1784, %v73_v19   ;;  %v92_v45 = vld [vmem:[%s2348_s1 + $0xc0] sm:$0xff]  ;;  %v1804_v47 = vld [vmem:[%s2349_s5 + $0x8] sm:$0xff]   ;;  %v94_v49 = vld [vmem:[%s2348_s1 + $0xd0] sm:$0xff] }
  0x11   :  { %1680 = vmatprep.subr.bf16.mxu1 %v1803_v44  ;;  %v95_v50 = vld [vmem:[%s2348_s1 + $0xd8] sm:$0xff]  ;;  %v96_v52 = vld [vmem:[%s2348_s1 + $0xe0] sm:$0xff]  ;;  %v97_v53 = vld [vmem:[%s2348_s1 + $0xe8] sm:$0xff] }
  0x12   :  { %1653 = vmatmul.mubr.msk.bf16.gmra.mrb[4].mxu0 %vm388_vm1, %v1793_v10  ;;  %1669 = vmatmul.mubr.msk.bf16.gmra.mrb[4].mxu1 %vm388_vm1, %v1794_v11  ;;  %v1806_v51 = vld [vmem:[%s2349_s5 + $0x18] sm:$0xff]   ;;  %v1807_v54 = vld [vmem:[%s2349_s5 + $0x20] sm:$0xff]   ;;  %v98_v55 = vld [vmem:[%s2348_s1 + $0xf0] sm:$0xff] }
  0x13   :  { %1656 = vmatprep.mubr.msk.bf16.mxu0 %vm388_vm1, %v1795_v12  ;;  %1672 = vmatprep.mubr.msk.bf16.mxu1 %vm388_vm1, %v1796_v15  ;;  %v99_v56 = vld [vmem:[%s2348_s1 + $0xf8] sm:$0xff]  ;;  %v1808_v57 = vld [vmem:[%s2349_s5 + $0x28] sm:$0xff]   ;;  %v1809_v58 = vld [vmem:[%s2349_s5 + $0x30] sm:$0xff]  }
  0x14   :  { %133 = vperm.xlu0 %1783, %v74_v24   ;;  %138 = vperm.xlu1 %1784, %v75_v25   ;;  %v1810_v59 = vld [vmem:[%s2349_s5 + $0x38] sm:$0xff]   ;;  %v1811_v4 = vld [vmem:[%s2350_s7] sm:$0xff]   ;;  %v1812_v5 = vld [vmem:[%s2350_s7 + $0x8] sm:$0xff]  }
  0x15   :  { %1681 = vmatpush3.bf16.msra.mxu1 %v1803_v44  ;;  %1728 = vmatprep.subr.bf16.mxu0 %v1811_v4  ;;  %v1813_v8 = vld [vmem:[%s2350_s7 + $0x10] sm:$0xff]   ;;  %v1814_v9 = vld [vmem:[%s2350_s7 + $0x18] sm:$0xff]   ;;  %v1815_v12 = vld [vmem:[%s2350_s7 + $0x20] sm:$0xff]  }
  0x16   :  { %1682 = vmatprep.subr.bf16.mxu1 %v1804_v47  ;;  %1729 = vmatpush3.bf16.msra.mxu0 %v1811_v4  ;;  %v1816_v15 = vld [vmem:[%s2350_s7 + $0x28] sm:$0xff]  }
  0x17   :  { %1730 = vmatprep.subr.bf16.mxu0 %v1812_v5 }
  0x18   :  { %143 = vperm.xlu0 %1783, %v76_v26   ;;  %148 = vperm.xlu1 %1784, %v77_v27  }
  0x19   :  { %1683 = vmatpush3.bf16.msra.mxu1 %v1804_v47 }
  0x1a   :  { %1657 = vmatmul.mubr.msk.bf16.gmra.mrb[8].mxu0 %vm388_vm1, %v1797_v20  ;;  %1673 = vmatmul.mubr.msk.bf16.gmra.mrb[8].mxu1 %vm388_vm1, %v1798_v21 }
  0x1b   :  { %1660 = vmatprep.mubr.msk.bf16.mxu0 %vm388_vm1, %v1799_v22  ;;  %1676 = vmatprep.mubr.msk.bf16.mxu1 %vm388_vm1, %v1800_v23 }
  0x1c   :  { %153 = vperm.xlu0 %1783, %v78_v30   ;;  %158 = vperm.xlu1 %1784, %v79_v31  }
  0x1d   :  { %1684 = vmatprep.subr.bf16.mxu1 %v1805_v48  ;;  %1731 = vmatpush3.bf16.msra.mxu0 %v1812_v5 }
  0x1e   :  { %1685 = vmatpush3.bf16.msra.mxu1 %v1805_v48  ;;  %1732 = vmatprep.subr.bf16.mxu0 %v1813_v8  ;;  %v2131_v48 = vld [vmem:[%s2352_s4] ss:$0 sm:$0xff] }
  0x1f   :  { %1686 = vmatprep.subr.bf16.mxu1 %v1806_v51 }
  0x20   :  { %163 = vperm.xlu0 %1783, %v80_v32   ;;  %168 = vperm.xlu1 %1784, %v81_v33  }
  0x21   :  { %1733 = vmatpush3.bf16.msra.mxu0 %v1813_v8 }
  0x22   :  { %1661 = vmatmul.mubr.msk.bf16.gmra.mrb[12].mxu0 %vm388_vm1, %v1801_v28  ;;  %1677 = vmatmul.mubr.msk.bf16.gmra.mrb[12].mxu1 %vm388_vm1, %v1802_v29  ;;  %v2088_v28 = vld [vmem:[%s2351_s3] ss:$0 sm:$0xff] }
  0x23   :  { %1687 = vmatpush3.bf16.msra.mxu1 %v1806_v51  ;;  %1734 = vmatprep.subr.bf16.mxu0 %v1814_v9 }
  0x24   :  { %173 = vperm.xlu0 %1783, %v82_v34   ;;  %178 = vperm.xlu1 %1784, %v83_v35  }
  0x25   :  { %1688 = vmatprep.subr.bf16.mxu1 %v1807_v54  ;;  %1735 = vmatpush3.bf16.msra.mxu0 %v1814_v9 }
  0x26   :  { %1736 = vmatprep.subr.bf16.mxu0 %v1815_v12 }
  0x27   :  { %1689 = vmatpush3.bf16.msra.mxu1 %v1807_v54 }
  0x28   :  { %183 = vperm.xlu0 %1783, %v84_v36   ;;  %188 = vperm.xlu1 %1784, %v85_v37  }
  0x29   :  { %1690 = vmatprep.subr.bf16.mxu1 %v1808_v57  ;;  %1737 = vmatpush3.bf16.msra.mxu0 %v1815_v12 }
  0x2a   :  { %1738 = vmatprep.subr.bf16.mxu0 %v1816_v15 }
  0x2b   :  { %1691 = vmatpush3.bf16.msra.mxu1 %v1808_v57 }
  0x2c   :  { %193 = vperm.xlu0 %1783, %v86_v38   ;;  %198 = vperm.xlu1 %1784, %v87_v39  }
  0x2d   :  { %1692 = vmatprep.subr.bf16.mxu1 %v1809_v58  ;;  %1739 = vmatpush3.bf16.msra.mxu0 %v1816_v15 }
  0x2f   :  { %1693 = vmatpush3.bf16.msra.mxu1 %v1809_v58 }
  0x30   :  { %203 = vperm.xlu0 %1783, %v88_v40   ;;  %208 = vperm.xlu1 %1784, %v89_v41  }
  0x31   :  { %1694 = vmatprep.subr.bf16.mxu1 %v1810_v59 }
  0x33   :  { %1695 = vmatpush3.bf16.msra.mxu1 %v1810_v59 }
  0x34   :  { %213 = vperm.xlu0 %1783, %v90_v42   ;;  %218 = vperm.xlu1 %1784, %v91_v43  }
  0x38   :  { %223 = vperm.xlu0 %1783, %v92_v45   ;;  %228 = vperm.xlu1 %1784, %v93_v46  }
  0x3c   :  { %233 = vperm.xlu0 %1783, %v94_v49   ;;  %238 = vperm.xlu1 %1784, %v95_v50  }
  0x40   :  { %243 = vperm.xlu0 %1783, %v96_v52   ;;  %248 = vperm.xlu1 %1784, %v97_v53  }
  0x44   :  { %253 = vperm.xlu0 %1783, %v98_v55   ;;  %258 = vperm.xlu1 %1784, %v99_v56  }
  0x85   :  { %v104_v60 = vpop.permute.xlu0 %103  ;;  %v114_v61 = vpop.permute.xlu1 %113 }
  0x86   :  { %v267_v29 = vmul.f32 %v2088_v28, %v104_v60  ;;  %v269_v30 = vmul.f32 %v2088_v28, %v114_v61 }
  0x8b   :  { %v109_v62 = vpop.permute.xlu0 %108  ;;  %v119_v63 = vpop.permute.xlu1 %118 }
  0x8c   :  { %v268_v31 = vmul.f32 %v2088_v28, %v109_v62  ;;  %v270_v33 = vmul.f32 %v2088_v28, %v119_v63 }
  0x8f   :  { %v124_v0 = vpop.permute.xlu0 %123  ;;  %v129_v1 = vpop.permute.xlu1 %128 }
  0x90   :  { %v2096_v34 = vmul.f32 %v2088_v28, %v124_v0  ;;  %v2099_v35 = vmul.f32 %v2088_v28, %v129_v1 }
  0x93   :  { %v134_v2 = vpop.permute.xlu0 %133  ;;  %v139_v3 = vpop.permute.xlu1 %138 }
  0x94   :  { %v273_v36 = vmul.f32 %v2088_v28, %v134_v2  ;;  %v2103_v37 = vmul.f32 %v2088_v28, %v139_v3 }
  0x97   :  { %v144_v6 = vpop.permute.xlu0 %143  ;;  %v149_v7 = vpop.permute.xlu1 %148 }
  0x98   :  { %v2106_v38 = vmul.f32 %v2088_v28, %v144_v6  ;;  %v2109_v39 = vmul.f32 %v2088_v28, %v149_v7 }
  0x9b   :  { %v154_v10 = vpop.permute.xlu0 %153  ;;  %v159_v11 = vpop.permute.xlu1 %158 }
  0x9c   :  { %v2112_v40 = vmul.f32 %v2088_v28, %v154_v10  ;;  %v2119_v43 = vmul.f32 %v2088_v28, %v159_v11 }
  0x9f   :  { %v164_v13 = vpop.permute.xlu0 %163  ;;  %v169_v14 = vpop.permute.xlu1 %168 }
  0xa0   :  { %v2122_v44 = vmul.f32 %v2088_v28, %v164_v13  ;;  %v2125_v45 = vmul.f32 %v2088_v28, %v169_v14 }
  0xa3   :  { %v174_v16 = vpop.permute.xlu0 %173  ;;  %v179_v17 = vpop.permute.xlu1 %178 }
  0xa4   :  { %v2134_v50 = vmul.f32 %v2088_v28, %v174_v16  ;;  %v2138_v56 = vmul.f32 %v2088_v28, %v179_v17 }
  0xa7   :  { %v184_v18 = vpop.permute.xlu0 %183  ;;  %v189_v19 = vpop.permute.xlu1 %188 }
  0xa8   :  { %v283_v46 = vmul.f32 %v2088_v28, %v184_v18  ;;  %v284_v57 = vmul.f32 %v2088_v28, %v189_v19 }
  0xab   :  { %v194_v20 = vpop.permute.xlu0 %193  ;;  %v199_v21 = vpop.permute.xlu1 %198 }
  0xac   :  { %v285_v32 = vmul.f32 %v2088_v28, %v194_v20  ;;  %v286_v51 = vmul.f32 %v2088_v28, %v199_v21 }
  0xaf   :  { %v204_v22 = vpop.permute.xlu0 %203  ;;  %v209_v23 = vpop.permute.xlu1 %208 }
  0xb0   :  { %v287_v8 = vmul.f32 %v2088_v28, %v204_v22  ;;  %v288_v9 = vmul.f32 %v2088_v28, %v209_v23 }
  0xb3   :  { %v214_v24 = vpop.permute.xlu0 %213  ;;  %v219_v25 = vpop.permute.xlu1 %218 }
  0xb4   :  { %v289_v12 = vmul.f32 %v2088_v28, %v214_v24  ;;  %v290_v13 = vmul.f32 %v2088_v28, %v219_v25 }
  0xb7   :  { %v2081_v26 = vpop.permute.xlu0 %223  ;;  %v2083_v27 = vpop.permute.xlu1 %228 }
  0xbb   :  { %v2114_v41 = vpop.permute.xlu0 %233  ;;  %v2116_v42 = vpop.permute.xlu1 %238 }
  0xbf   :  { %v2153_v16 = vpop.permute.xlu0 %243  ;;  %v2155_v17 = vpop.permute.xlu1 %248 }
  0xdd   :  { %v1650_v47 = vpop.f32.mrb[0].mxu0  ;;  %v1666_v49 = vpop.f32.mrb[0].mxu1 }
  0xde   :  { %v484_v52 = vadd.f32 %v1650_v47, %v269_v30  ;;  %v548_v53 = vadd.f32 %v1666_v49, %v285_v32  ;;  %v475_v54 = vpop.f32.mrb[1].mxu0  ;;  %v539_v55 = vpop.f32.mrb[1].mxu1 }
  0xdf   :  { %v476_v58 = vadd.f32 %v475_v54, %v267_v29  ;;  %v540_v59 = vadd.f32 %v539_v55, %v283_v46  ;;  %v1651_v60 = vpop.f32.mrb[2].mxu0  ;;  %v1667_v61 = vpop.f32.mrb[2].mxu1 }
  0xe0   :  { %v611_v62 = vadd.f32 %v2131_v48, %v484_v52  ;;  %v627_v63 = vadd.f32 %v2131_v48, %v548_v53  ;;  %v487_v0 = vadd.f32 %v1651_v60, %v270_v33  ;;  %v551_v1 = vadd.f32 %v1667_v61, %v286_v51  ;;  %v478_v2 = vpop.f32.mrb[3].mxu0  ;;  %v542_v3 = vpop.f32.mrb[3].mxu1 }
  0xe1   :  { %v609_v4 = vadd.f32 %v2131_v48, %v476_v58  ;;  %v625_v5 = vadd.f32 %v2131_v48, %v540_v59  ;;  %v479_v6 = vadd.f32 %v478_v2, %v268_v31  ;;  %v543_v7 = vadd.f32 %v542_v3, %v284_v57 }
  0xe2   :  { %v612_v10 = vadd.f32 %v2131_v48, %v487_v0  ;;  %v628_v11 = vadd.f32 %v2131_v48, %v551_v1  ;;  %v643_v18 = vmax.f32 %v611_v62, 0.0  ;;  %v659_v19 = vmax.f32 %v627_v63, 0.0 }
  0xe3   :  { %v610_v14 = vadd.f32 %v2131_v48, %v479_v6  ;;  %v626_v15 = vadd.f32 %v2131_v48, %v543_v7  ;;  %v641_v22 = vmax.f32 %v609_v4, 0.0  ;;  %v657_v23 = vmax.f32 %v625_v5, 0.0 }
  0xe4   :  { %v644_v20 = vmax.f32 %v612_v10, 0.0  ;;  %v660_v21 = vmax.f32 %v628_v11, 0.0  ;;  %v291_v2 = vmul.f32 %v2088_v28, %v2081_v26  ;;  %v292_v3 = vmul.f32 %v2088_v28, %v2083_v27  ;;  %v259_v26 = vpop.permute.xlu1 %258 }
  0xe5   :  { %v642_v29 = vmax.f32 %v610_v14, 0.0  ;;  %v658_v30 = vmax.f32 %v626_v15, 0.0  ;;  %v1654_v31 = vpop.f32.mrb[4].mxu0  ;;  %v1670_v24 = vpop.f32.mrb[4].mxu1  ;;  %v293_v5 = vmul.f32 %v2088_v28, %v2114_v41  ;;  %v294_v6 = vmul.f32 %v2088_v28, %v2116_v42 }
  0xe6   :  { %v674_v32 = vpack.c.bf16 %v644_v20, %v643_v18  ;;  %v500_v25 = vadd.f32 %v1654_v31, %v273_v36  ;;  %v564_v33 = vadd.f32 %v1670_v24, %v289_v12  ;;  %v491_v46 = vpop.f32.mrb[5].mxu0  ;;  %v555_v47 = vpop.f32.mrb[5].mxu1  ;;  %v2157_v49 = vpack.c.bf16 %v660_v21, %v659_v19 }
  0xe7   :  { %v492_v51 = vadd.f32 %v491_v46, %v2096_v34  ;;  %v556_v52 = vadd.f32 %v555_v47, %v287_v8  ;;  %v1655_v53 = vpop.f32.mrb[6].mxu0  ;;  %v1671_v54 = vpop.f32.mrb[6].mxu1  ;;  %v673_v55 = vpack.c.bf16 %v642_v29, %v641_v22  ;;  %v2160_v57 = vpack.c.bf16 %v658_v30, %v657_v23 }
  0xe8   :  { %v615_v58 = vadd.f32 %v2131_v48, %v500_v25  ;;  %v631_v59 = vadd.f32 %v2131_v48, %v564_v33  ;;  %v503_v60 = vadd.f32 %v1655_v53, %v2103_v37  ;;  %v567_v36 = vadd.f32 %v1671_v54, %v290_v13  ;;  %v494_v61 = vpop.f32.mrb[7].mxu0  ;;  %v558_v62 = vpop.f32.mrb[7].mxu1 }
  0xe9   :  { %v613_v63 = vadd.f32 %v2131_v48, %v492_v51  ;;  %v629_v0 = vadd.f32 %v2131_v48, %v556_v52  ;;  %v495_v34 = vadd.f32 %v494_v61, %v2099_v35  ;;  %v559_v1 = vadd.f32 %v558_v62, %v288_v9  ;;  %1696 = vmatprep.mubr.bf16.mxu1 %v673_v55  ;;  %v254_v8 = vpop.permute.xlu0 %253 }
  0xea   :  { %v616_v4 = vadd.f32 %v2131_v48, %v503_v60  ;;  %v632_v37 = vadd.f32 %v2131_v48, %v567_v36  ;;  %1697 = vmatmul.mubr.bf16.vlgmr.msra.gmra.mrb[16].mxu1 %v674_v32  ;;  %v647_v9 = vmax.f32 %v615_v58, 0.0  ;;  %v663_v10 = vmax.f32 %v631_v59, 0.0 }
  0xeb   :  { %v614_v35 = vadd.f32 %v2131_v48, %v495_v34  ;;  %v630_v7 = vadd.f32 %v2131_v48, %v559_v1  ;;  %v645_v12 = vmax.f32 %v613_v63, 0.0  ;;  %v661_v13 = vmax.f32 %v629_v0, 0.0 }
  0xec   :  { %v648_v27 = vmax.f32 %v616_v4, 0.0  ;;  %v664_v11 = vmax.f32 %v632_v37, 0.0  ;;  %v295_v58 = vmul.f32 %v2088_v28, %v2153_v16  ;;  %v296_v59 = vmul.f32 %v2088_v28, %v2155_v17 }
  0xed   :  { %v646_v14 = vmax.f32 %v614_v35, 0.0  ;;  %v662_v15 = vmax.f32 %v630_v7, 0.0  ;;  %v1658_v18 = vpop.f32.mrb[8].mxu0  ;;  %v1674_v19 = vpop.f32.mrb[8].mxu1  ;;  %v297_v36 = vmul.f32 %v2088_v28, %v254_v8  ;;  %v298_v61 = vmul.f32 %v2088_v28, %v259_v26 }
  0xee   :  { %v516_v41 = vadd.f32 %v1658_v18, %v2112_v40  ;;  %v580_v20 = vadd.f32 %v1674_v19, %v293_v5  ;;  %v507_v42 = vpop.f32.mrb[9].mxu0  ;;  %v571_v21 = vpop.f32.mrb[9].mxu1  ;;  %v676_v22 = vpack.c.bf16 %v648_v27, %v647_v9  ;;  %v2181_v23 = vpack.c.bf16 %v664_v11, %v663_v10 }
  0xef   :  { %v508_v29 = vadd.f32 %v507_v42, %v2106_v38  ;;  %v572_v30 = vadd.f32 %v571_v21, %v291_v2  ;;  %v1659_v31 = vpop.f32.mrb[10].mxu0  ;;  %v1675_v24 = vpop.f32.mrb[10].mxu1  ;;  %v675_v32 = vpack.c.bf16 %v646_v14, %v645_v12  ;;  %v2184_v25 = vpack.c.bf16 %v662_v15, %v661_v13 }
  0xf0   :  { %v619_v33 = vadd.f32 %v2131_v48, %v516_v41  ;;  %v635_v46 = vadd.f32 %v2131_v48, %v580_v20  ;;  %v519_v40 = vadd.f32 %v1659_v31, %v2119_v43  ;;  %v583_v47 = vadd.f32 %v1675_v24, %v294_v6  ;;  %v510_v51 = vpop.f32.mrb[11].mxu0  ;;  %v574_v52 = vpop.f32.mrb[11].mxu1 }
  0xf1   :  { %v617_v53 = vadd.f32 %v2131_v48, %v508_v29  ;;  %v633_v54 = vadd.f32 %v2131_v48, %v572_v30  ;;  %v511_v38 = vadd.f32 %v510_v51, %v2109_v39  ;;  %v575_v55 = vadd.f32 %v574_v52, %v292_v3  ;;  %1700 = vmatprep.mubr.bf16.mxu1 %v675_v32 }
  0xf2   :  { %v620_v60 = vadd.f32 %v2131_v48, %v519_v40  ;;  %v636_v43 = vadd.f32 %v2131_v48, %v583_v47  ;;  %1701 = vmatmul.mubr.bf16.gmra.mrb[20].mxu1 %v676_v22  ;;  %v651_v63 = vmax.f32 %v619_v33, 0.0  ;;  %v667_v0 = vmax.f32 %v635_v46, 0.0 }
  0xf3   :  { %v618_v62 = vadd.f32 %v2131_v48, %v511_v38  ;;  %v634_v39 = vadd.f32 %v2131_v48, %v575_v55  ;;  %v649_v1 = vmax.f32 %v617_v53, 0.0  ;;  %v665_v2 = vmax.f32 %v633_v54, 0.0 }
  0xf4   :  { %v652_v34 = vmax.f32 %v620_v60, 0.0  ;;  %v668_v16 = vmax.f32 %v636_v43, 0.0 }
  0xf5   :  { %v650_v17 = vmax.f32 %v618_v62, 0.0  ;;  %v666_v3 = vmax.f32 %v634_v39, 0.0  ;;  %v1662_v4 = vpop.f32.mrb[12].mxu0  ;;  %v1678_v37 = vpop.f32.mrb[12].mxu1 }
  0xf6   :  { %v532_v5 = vadd.f32 %v1662_v4, %v2134_v50  ;;  %v596_v6 = vadd.f32 %v1678_v37, %v297_v36  ;;  %v523_v35 = vpop.f32.mrb[13].mxu0  ;;  %v587_v7 = vpop.f32.mrb[13].mxu1  ;;  %v678_v28 = vpack.c.bf16 %v652_v34, %v651_v63  ;;  %v686_v8 = vpack.c.bf16 %v668_v16, %v667_v0 }
  0xf7   :  { %v524_v26 = vadd.f32 %v523_v35, %v2122_v44  ;;  %v588_v9 = vadd.f32 %v587_v7, %v295_v58  ;;  %v1663_v10 = vpop.f32.mrb[14].mxu0  ;;  %v1679_v27 = vpop.f32.mrb[14].mxu1  ;;  %v677_v11 = vpack.c.bf16 %v650_v17, %v649_v1  ;;  %v685_v12 = vpack.c.bf16 %v666_v3, %v665_v2 }
  0xf8   :  { %v623_v13 = vadd.f32 %v2131_v48, %v532_v5  ;;  %v639_v14 = vadd.f32 %v2131_v48, %v596_v6  ;;  %v535_v15 = vadd.f32 %v1663_v10, %v2138_v56  ;;  %v599_v18 = vadd.f32 %v1679_v27, %v298_v61  ;;  %v526_v50 = vpop.f32.mrb[15].mxu0  ;;  %v590_v19 = vpop.f32.mrb[15].mxu1 }
  0xf9   :  { %v621_v41 = vadd.f32 %v2131_v48, %v524_v26  ;;  %v637_v20 = vadd.f32 %v2131_v48, %v588_v9  ;;  %v527_v44 = vadd.f32 %v526_v50, %v2125_v45  ;;  %v591_v42 = vadd.f32 %v590_v19, %v296_v59  ;;  %1704 = vmatprep.mubr.bf16.mxu1 %v677_v11 }
  0xfa   :  { %v624_v21 = vadd.f32 %v2131_v48, %v535_v15  ;;  %v640_v22 = vadd.f32 %v2131_v48, %v599_v18  ;;  %1705 = vmatmul.mubr.bf16.gmra.mrb[24].mxu1 %v678_v28  ;;  %v655_v30 = vmax.f32 %v623_v13, 0.0  ;;  %v671_v31 = vmax.f32 %v639_v14, 0.0 }
  0xfb   :  { %v622_v29 = vadd.f32 %v2131_v48, %v527_v44  ;;  %v638_v56 = vadd.f32 %v2131_v48, %v591_v42  ;;  %v653_v33 = vmax.f32 %v621_v41, 0.0  ;;  %v669_v46 = vmax.f32 %v637_v20, 0.0  ;;  %v1817_v48 = vld [vmem:[%s2350_s7 + $0x30] sm:$0xff]  }
  0xfc   :  { %v656_v24 = vmax.f32 %v624_v21, 0.0  ;;  %v672_v32 = vmax.f32 %v640_v22, 0.0  ;;  %1740 = vmatprep.subr.bf16.mxu0 %v1817_v48 }
  0xfd   :  { %v654_v40 = vmax.f32 %v622_v29, 0.0  ;;  %v670_v47 = vmax.f32 %v638_v56, 0.0  ;;  %1741 = vmatpush3.bf16.msra.mxu0 %v1817_v48 }
  0xfe   :  { %v680_v45 = vpack.c.bf16 %v656_v24, %v655_v30  ;;  %v688_v51 = vpack.c.bf16 %v672_v32, %v671_v31 }
  0xff   :  { %v679_v52 = vpack.c.bf16 %v654_v40, %v653_v33  ;;  %v687_v53 = vpack.c.bf16 %v670_v47, %v669_v46 }
 0x101   :  { %1708 = vmatprep.mubr.bf16.mxu1 %v679_v52 }
 0x102   :  { %1709 = vmatmul.mubr.bf16.gmra.mrb[28].mxu1 %v680_v45 }
 0x103   :  { %1712 = vmatprep.mubr.bf16.mxu1 %v2160_v57  ;;  %v1818_v57 = vld [vmem:[%s2350_s7 + $0x38] sm:$0xff]  }
 0x104   :  { %1742 = vmatprep.subr.bf16.mxu0 %v1818_v57 }
 0x105   :  { %1743 = vmatpush3.bf16.msra.mxu0 %v1818_v57 }
 0x10a   :  { %1713 = vmatmul.mubr.bf16.gmra.mrb[32].mxu1 %v2157_v49  ;;  %v2227_v49 = vld [vmem:[%s2353_s6] ss:$0 sm:$0xff] }
 0x10b   :  { %1716 = vmatprep.mubr.bf16.mxu1 %v2184_v25 }
 0x112   :  { %1717 = vmatmul.mubr.bf16.gmra.mrb[36].mxu1 %v2181_v23 }
 0x113   :  { %1720 = vmatprep.mubr.bf16.mxu1 %v685_v12 }
 0x11a   :  { %1721 = vmatmul.mubr.bf16.gmra.mrb[40].mxu1 %v686_v8 }
 0x11b   :  { %1724 = vmatprep.mubr.bf16.mxu1 %v687_v53 }
 0x122   :  { %1725 = vmatmul.mubr.bf16.gmra.mrb[44].mxu1 %v688_v51 }
 0x1bd   :  { %v1698_v23 = vpop.f32.mrb[16].mxu1 }
 0x1be   :  { %v803_v25 = vadd.f32 %v1698_v23, %v2227_v49  ;;  %v794_v54 = vpop.f32.mrb[17].mxu1 }
 0x1bf   :  { %v795_v38 = vadd.f32 %v2227_v49, %v794_v54  ;;  %v1699_v55 = vpop.f32.mrb[18].mxu1 }
 0x1c0   :  { %v806_v58 = vadd.f32 %v1699_v55, %v2227_v49  ;;  %v797_v59 = vpop.f32.mrb[19].mxu1  ;;  %v923_v43 = vmax.f32 %v803_v25, 0.0 }
 0x1c1   :  { %v798_v60 = vadd.f32 %v2227_v49, %v797_v59  ;;  %v921_v61 = vmax.f32 %v795_v38, 0.0 }
 0x1c2   :  { %v924_v36 = vmax.f32 %v806_v58, 0.0 }
 0x1c3   :  { %v922_v62 = vmax.f32 %v798_v60, 0.0 }
 0x1c4   :  { %v954_v39 = vpack.c.bf16 %v924_v36, %v923_v43 }
 0x1c5   :  { %v953_v63 = vpack.c.bf16 %v922_v62, %v921_v61  ;;  %v1702_v0 = vpop.f32.mrb[20].mxu1 }
 0x1c6   :  { %v819_v34 = vadd.f32 %v1702_v0, %v2227_v49  ;;  %v810_v16 = vpop.f32.mrb[21].mxu1 }
 0x1c7   :  { %v811_v1 = vadd.f32 %v2227_v49, %v810_v16  ;;  %v1703_v2 = vpop.f32.mrb[22].mxu1  ;;  %1744 = vmatprep.mubr.bf16.mxu0 %v953_v63 }
 0x1c8   :  { %v822_v17 = vadd.f32 %v1703_v2, %v2227_v49  ;;  %v813_v3 = vpop.f32.mrb[23].mxu1  ;;  %1745 = vmatmul.mubr.bf16.vlgmr.msra.gmra.mrb[16].mxu0 %v954_v39  ;;  %v927_v37 = vmax.f32 %v819_v34, 0.0 }
 0x1c9   :  { %v814_v4 = vadd.f32 %v2227_v49, %v813_v3  ;;  %v925_v6 = vmax.f32 %v811_v1, 0.0 }
 0x1ca   :  { %v928_v5 = vmax.f32 %v822_v17, 0.0 }
 0x1cb   :  { %v926_v35 = vmax.f32 %v814_v4, 0.0 }
 0x1cc   :  { %v956_v7 = vpack.c.bf16 %v928_v5, %v927_v37 }
 0x1cd   :  { %v955_v28 = vpack.c.bf16 %v926_v35, %v925_v6  ;;  %v1706_v8 = vpop.f32.mrb[24].mxu1 }
 0x1ce   :  { %v835_v26 = vadd.f32 %v1706_v8, %v2227_v49  ;;  %v826_v9 = vpop.f32.mrb[25].mxu1 }
 0x1cf   :  { %v827_v10 = vadd.f32 %v2227_v49, %v826_v9  ;;  %v1707_v27 = vpop.f32.mrb[26].mxu1  ;;  %1748 = vmatprep.mubr.bf16.mxu0 %v955_v28 }
 0x1d0   :  { %v838_v11 = vadd.f32 %v1707_v27, %v2227_v49  ;;  %v829_v12 = vpop.f32.mrb[27].mxu1  ;;  %1749 = vmatmul.mubr.bf16.gmra.mrb[20].mxu0 %v956_v7  ;;  %v931_v14 = vmax.f32 %v835_v26, 0.0 }
 0x1d1   :  { %v830_v13 = vadd.f32 %v2227_v49, %v829_v12  ;;  %v929_v18 = vmax.f32 %v827_v10, 0.0 }
 0x1d2   :  { %v932_v15 = vmax.f32 %v838_v11, 0.0 }
 0x1d3   :  { %v930_v50 = vmax.f32 %v830_v13, 0.0 }
 0x1d4   :  { %v958_v19 = vpack.c.bf16 %v932_v15, %v931_v14 }
 0x1d5   :  { %v957_v41 = vpack.c.bf16 %v930_v50, %v929_v18  ;;  %v1710_v20 = vpop.f32.mrb[28].mxu1 }
 0x1d6   :  { %v851_v44 = vadd.f32 %v1710_v20, %v2227_v49  ;;  %v842_v42 = vpop.f32.mrb[29].mxu1 }
 0x1d7   :  { %v843_v21 = vadd.f32 %v2227_v49, %v842_v42  ;;  %v1711_v22 = vpop.f32.mrb[30].mxu1  ;;  %1752 = vmatprep.mubr.bf16.mxu0 %v957_v41 }
 0x1d8   :  { %v854_v29 = vadd.f32 %v1711_v22, %v2227_v49  ;;  %v845_v56 = vpop.f32.mrb[31].mxu1  ;;  %1753 = vmatmul.mubr.bf16.gmra.mrb[24].mxu0 %v958_v19  ;;  %v935_v31 = vmax.f32 %v851_v44, 0.0 }
 0x1d9   :  { %v846_v30 = vadd.f32 %v2227_v49, %v845_v56  ;;  %v933_v32 = vmax.f32 %v843_v21, 0.0 }
 0x1da   :  { %v936_v24 = vmax.f32 %v854_v29, 0.0 }
 0x1db   :  { %v934_v33 = vmax.f32 %v846_v30, 0.0 }
 0x1dc   :  { %v960_v46 = vpack.c.bf16 %v936_v24, %v935_v31  ;;  %v2264_v31 = vld [vmem:[%s2354_s8] ss:$0 sm:$0xff] }
 0x1dd   :  { %v959_v40 = vpack.c.bf16 %v934_v33, %v933_v32  ;;  %v1714_v47 = vpop.f32.mrb[32].mxu1 }
 0x1de   :  { %v867_v45 = vadd.f32 %v1714_v47, %v2227_v49  ;;  %v858_v51 = vpop.f32.mrb[33].mxu1 }
 0x1df   :  { %v859_v52 = vadd.f32 %v2227_v49, %v858_v51  ;;  %v1715_v53 = vpop.f32.mrb[34].mxu1  ;;  %1756 = vmatprep.mubr.bf16.mxu0 %v959_v40 }
 0x1e0   :  { %v870_v48 = vadd.f32 %v1715_v53, %v2227_v49  ;;  %v861_v57 = vpop.f32.mrb[35].mxu1  ;;  %1757 = vmatmul.mubr.bf16.gmra.mrb[28].mxu0 %v960_v46  ;;  %v939_v25 = vmax.f32 %v867_v45, 0.0 }
 0x1e1   :  { %v862_v23 = vadd.f32 %v2227_v49, %v861_v57  ;;  %v937_v38 = vmax.f32 %v859_v52, 0.0 }
 0x1e2   :  { %v940_v54 = vmax.f32 %v870_v48, 0.0 }
 0x1e3   :  { %v938_v55 = vmax.f32 %v862_v23, 0.0 }
 0x1e4   :  { %v962_v58 = vpack.c.bf16 %v940_v54, %v939_v25 }
 0x1e5   :  { %v961_v59 = vpack.c.bf16 %v938_v55, %v937_v38  ;;  %v1718_v60 = vpop.f32.mrb[36].mxu1 }
 0x1e6   :  { %v883_v43 = vadd.f32 %v1718_v60, %v2227_v49  ;;  %v874_v36 = vpop.f32.mrb[37].mxu1 }
 0x1e7   :  { %v875_v61 = vadd.f32 %v2227_v49, %v874_v36  ;;  %v1719_v62 = vpop.f32.mrb[38].mxu1  ;;  %1760 = vmatprep.mubr.bf16.mxu0 %v961_v59 }
 0x1e8   :  { %v886_v39 = vadd.f32 %v1719_v62, %v2227_v49  ;;  %v877_v63 = vpop.f32.mrb[39].mxu1  ;;  %1761 = vmatmul.mubr.bf16.gmra.mrb[32].mxu0 %v962_v58  ;;  %v943_v34 = vmax.f32 %v883_v43, 0.0 }
 0x1e9   :  { %v878_v0 = vadd.f32 %v2227_v49, %v877_v63  ;;  %v941_v1 = vmax.f32 %v875_v61, 0.0 }
 0x1ea   :  { %v944_v16 = vmax.f32 %v886_v39, 0.0 }
 0x1eb   :  { %v942_v2 = vmax.f32 %v878_v0, 0.0 }
 0x1ec   :  { %v964_v17 = vpack.c.bf16 %v944_v16, %v943_v34 }
 0x1ed   :  { %v963_v3 = vpack.c.bf16 %v942_v2, %v941_v1  ;;  %v1722_v4 = vpop.f32.mrb[40].mxu1 }
 0x1ee   :  { %v899_v37 = vadd.f32 %v1722_v4, %v2227_v49  ;;  %v890_v5 = vpop.f32.mrb[41].mxu1 }
 0x1ef   :  { %v891_v6 = vadd.f32 %v2227_v49, %v890_v5  ;;  %v1723_v35 = vpop.f32.mrb[42].mxu1  ;;  %1764 = vmatprep.mubr.bf16.mxu0 %v963_v3 }
 0x1f0   :  { %v902_v7 = vadd.f32 %v1723_v35, %v2227_v49  ;;  %v893_v28 = vpop.f32.mrb[43].mxu1  ;;  %1765 = vmatmul.mubr.bf16.gmra.mrb[36].mxu0 %v964_v17  ;;  %v947_v26 = vmax.f32 %v899_v37, 0.0 }
 0x1f1   :  { %v894_v8 = vadd.f32 %v2227_v49, %v893_v28  ;;  %v945_v10 = vmax.f32 %v891_v6, 0.0 }
 0x1f2   :  { %v948_v9 = vmax.f32 %v902_v7, 0.0 }
 0x1f3   :  { %v946_v27 = vmax.f32 %v894_v8, 0.0 }
 0x1f4   :  { %v966_v11 = vpack.c.bf16 %v948_v9, %v947_v26 }
 0x1f5   :  { %v965_v12 = vpack.c.bf16 %v946_v27, %v945_v10  ;;  %v1726_v13 = vpop.f32.mrb[44].mxu1 }
 0x1f6   :  { %v915_v14 = vadd.f32 %v1726_v13, %v2227_v49  ;;  %v906_v15 = vpop.f32.mrb[45].mxu1 }
 0x1f7   :  { %v907_v18 = vadd.f32 %v2227_v49, %v906_v15  ;;  %v1727_v50 = vpop.f32.mrb[46].mxu1  ;;  %1768 = vmatprep.mubr.bf16.mxu0 %v965_v12 }
 0x1f8   :  { %v918_v19 = vadd.f32 %v1727_v50, %v2227_v49  ;;  %v909_v41 = vpop.f32.mrb[47].mxu1  ;;  %1769 = vmatmul.mubr.bf16.gmra.mrb[40].mxu0 %v966_v11  ;;  %v951_v44 = vmax.f32 %v915_v14, 0.0 }
 0x1f9   :  { %v910_v20 = vadd.f32 %v2227_v49, %v909_v41  ;;  %v949_v21 = vmax.f32 %v907_v18, 0.0 }
 0x1fa   :  { %v952_v42 = vmax.f32 %v918_v19, 0.0 }
 0x1fb   :  { %v950_v22 = vmax.f32 %v910_v20, 0.0 }
 0x1fc   :  { %v968_v29 = vpack.c.bf16 %v952_v42, %v951_v44 }
 0x1fd   :  { %v967_v56 = vpack.c.bf16 %v950_v22, %v949_v21 }
 0x1ff   :  { %1772 = vmatprep.mubr.bf16.mxu0 %v967_v56 }
 0x200   :  { %1773 = vmatmul.mubr.bf16.gmra.mrb[44].mxu0 %v968_v29 }
 0x29b   :  { %v1746_v30 = vpop.f32.mrb[16].mxu0 }
 0x29c   :  { %v1074_v24 = vpop.f32.mrb[17].mxu0  ;;  %v1083_v33 = vadd.f32 %v1746_v30, %v2264_v31 }
 0x29d   :  { %v1747_v32 = vpop.f32.mrb[18].mxu0  ;;  %v1075_v40 = vadd.f32 %v2264_v31, %v1074_v24 }
 0x29e   :  { %v1086_v49 = vadd.f32 %v1747_v32, %v2264_v31  ;;  %v1077_v46 = vpop.f32.mrb[19].mxu0 }
 0x29f   :  { %v1078_v47 = vadd.f32 %v2264_v31, %v1077_v46 }
 0x2a0   :  { %v1491_v45 = vpack.c.bf16 %v1086_v49, %v1083_v33 }
 0x2a1   :  { %v1486_v51 = vpack.c.bf16 %v1078_v47, %v1075_v40 }
 0x2a2   :  { %1563 = vst [vmem:[%s2355_s9 + $0x8] sm:$0xff] %v1491_v45  }
 0x2a3   :  { %1487 = vst [vmem:[%s2355_s9] sm:$0xff] %v1486_v51   ;;  %v1750_v52 = vpop.f32.mrb[20].mxu0 }
 0x2a4   :  { %v1090_v53 = vpop.f32.mrb[21].mxu0  ;;  %v1099_v57 = vadd.f32 %v1750_v52, %v2264_v31 }
 0x2a5   :  { %v1751_v48 = vpop.f32.mrb[22].mxu0  ;;  %v1091_v54 = vadd.f32 %v2264_v31, %v1090_v53 }
 0x2a6   :  { %v1102_v23 = vadd.f32 %v1751_v48, %v2264_v31  ;;  %v1093_v25 = vpop.f32.mrb[23].mxu0 }
 0x2a7   :  { %v1094_v38 = vadd.f32 %v2264_v31, %v1093_v25 }
 0x2a8   :  { %v1501_v55 = vpack.c.bf16 %v1102_v23, %v1099_v57 }
 0x2a9   :  { %v1496_v58 = vpack.c.bf16 %v1094_v38, %v1091_v54 }
 0x2aa   :  { %1565 = vst [vmem:[%s2355_s9 + $0x18] sm:$0xff] %v1501_v55  }
 0x2ab   :  { %1564 = vst [vmem:[%s2355_s9 + $0x10] sm:$0xff] %v1496_v58   ;;  %v1754_v59 = vpop.f32.mrb[24].mxu0 }
 0x2ac   :  { %v1106_v60 = vpop.f32.mrb[25].mxu0  ;;  %v1115_v36 = vadd.f32 %v1754_v59, %v2264_v31 }
 0x2ad   :  { %v1755_v43 = vpop.f32.mrb[26].mxu0  ;;  %v1107_v39 = vadd.f32 %v2264_v31, %v1106_v60 }
 0x2ae   :  { %v1118_v61 = vadd.f32 %v1755_v43, %v2264_v31  ;;  %v1109_v62 = vpop.f32.mrb[27].mxu0 }
 0x2af   :  { %v1110_v63 = vadd.f32 %v2264_v31, %v1109_v62 }
 0x2b0   :  { %v1511_v0 = vpack.c.bf16 %v1118_v61, %v1115_v36 }
 0x2b1   :  { %v1506_v34 = vpack.c.bf16 %v1110_v63, %v1107_v39 }
 0x2b2   :  { %1567 = vst [vmem:[%s2355_s9 + $0x28] sm:$0xff] %v1511_v0  }
 0x2b3   :  { %1566 = vst [vmem:[%s2355_s9 + $0x20] sm:$0xff] %v1506_v34   ;;  %v1758_v16 = vpop.f32.mrb[28].mxu0 }
 0x2b4   :  { %v1122_v1 = vpop.f32.mrb[29].mxu0  ;;  %v1131_v17 = vadd.f32 %v1758_v16, %v2264_v31 }
 0x2b5   :  { %v1759_v2 = vpop.f32.mrb[30].mxu0  ;;  %v1123_v37 = vadd.f32 %v2264_v31, %v1122_v1 }
 0x2b6   :  { %v1134_v3 = vadd.f32 %v1759_v2, %v2264_v31  ;;  %v1125_v4 = vpop.f32.mrb[31].mxu0 }
 0x2b7   :  { %v1126_v5 = vadd.f32 %v2264_v31, %v1125_v4 }
 0x2b8   :  { %v1521_v6 = vpack.c.bf16 %v1134_v3, %v1131_v17 }
 0x2b9   :  { %v1516_v35 = vpack.c.bf16 %v1126_v5, %v1123_v37 }
 0x2ba   :  { %1569 = vst [vmem:[%s2355_s9 + $0x38] sm:$0xff] %v1521_v6  }
 0x2bb   :  { %1568 = vst [vmem:[%s2355_s9 + $0x30] sm:$0xff] %v1516_v35   ;;  %v1762_v7 = vpop.f32.mrb[32].mxu0 }
 0x2bc   :  { %v1138_v28 = vpop.f32.mrb[33].mxu0  ;;  %v1147_v26 = vadd.f32 %v1762_v7, %v2264_v31 }
 0x2bd   :  { %v1763_v8 = vpop.f32.mrb[34].mxu0  ;;  %v1139_v27 = vadd.f32 %v2264_v31, %v1138_v28 }
 0x2be   :  { %v1150_v9 = vadd.f32 %v1763_v8, %v2264_v31  ;;  %v1141_v10 = vpop.f32.mrb[35].mxu0 }
 0x2bf   :  { %v1142_v11 = vadd.f32 %v2264_v31, %v1141_v10 }
 0x2c0   :  { %v1531_v12 = vpack.c.bf16 %v1150_v9, %v1147_v26 }
 0x2c1   :  { %v1526_v13 = vpack.c.bf16 %v1142_v11, %v1139_v27 }
 0x2c2   :  { %1571 = vst [vmem:[%s2355_s9 + $0x48] sm:$0xff] %v1531_v12  }
 0x2c3   :  { %1570 = vst [vmem:[%s2355_s9 + $0x40] sm:$0xff] %v1526_v13   ;;  %v1766_v14 = vpop.f32.mrb[36].mxu0 }
 0x2c4   :  { %v1154_v15 = vpop.f32.mrb[37].mxu0  ;;  %v1163_v50 = vadd.f32 %v1766_v14, %v2264_v31 }
 0x2c5   :  { %v1767_v18 = vpop.f32.mrb[38].mxu0  ;;  %v1155_v20 = vadd.f32 %v2264_v31, %v1154_v15 }
 0x2c6   :  { %v1166_v19 = vadd.f32 %v1767_v18, %v2264_v31  ;;  %v1157_v41 = vpop.f32.mrb[39].mxu0 }
 0x2c7   :  { %v1158_v44 = vadd.f32 %v2264_v31, %v1157_v41 }
 0x2c8   :  { %v1541_v42 = vpack.c.bf16 %v1166_v19, %v1163_v50 }
 0x2c9   :  { %v1536_v21 = vpack.c.bf16 %v1158_v44, %v1155_v20 }
 0x2ca   :  { %1573 = vst [vmem:[%s2355_s9 + $0x58] sm:$0xff] %v1541_v42  }
 0x2cb   :  { %1572 = vst [vmem:[%s2355_s9 + $0x50] sm:$0xff] %v1536_v21   ;;  %v1770_v22 = vpop.f32.mrb[40].mxu0 }
 0x2cc   :  { %v1170_v29 = vpop.f32.mrb[41].mxu0  ;;  %v1179_v30 = vadd.f32 %v1770_v22, %v2264_v31 }
 0x2cd   :  { %v1771_v56 = vpop.f32.mrb[42].mxu0  ;;  %v1171_v33 = vadd.f32 %v2264_v31, %v1170_v29 }
 0x2ce   :  { %v1182_v24 = vadd.f32 %v1771_v56, %v2264_v31  ;;  %v1173_v32 = vpop.f32.mrb[43].mxu0 }
 0x2cf   :  { %v1174_v49 = vadd.f32 %v2264_v31, %v1173_v32 }
 0x2d0   :  { %v1551_v46 = vpack.c.bf16 %v1182_v24, %v1179_v30 }
 0x2d1   :  { %v1546_v40 = vpack.c.bf16 %v1174_v49, %v1171_v33 }
 0x2d2   :  { %1575 = vst [vmem:[%s2355_s9 + $0x68] sm:$0xff] %v1551_v46  }
 0x2d3   :  { %1574 = vst [vmem:[%s2355_s9 + $0x60] sm:$0xff] %v1546_v40   ;;  %v1774_v47 = vpop.f32.mrb[44].mxu0 }
 0x2d4   :  { %v1186_v45 = vpop.f32.mrb[45].mxu0  ;;  %v1195_v52 = vadd.f32 %v1774_v47, %v2264_v31 }
 0x2d5   :  { %v1775_v51 = vpop.f32.mrb[46].mxu0  ;;  %v1187_v57 = vadd.f32 %v2264_v31, %v1186_v45 }
 0x2d6   :  { %v1198_v53 = vadd.f32 %v1775_v51, %v2264_v31  ;;  %v1189_v48 = vpop.f32.mrb[47].mxu0 }
 0x2d7   :  { %v1190_v23 = vadd.f32 %v2264_v31, %v1189_v48 }
 0x2d8   :  { %v1561_v25 = vpack.c.bf16 %v1198_v53, %v1195_v52 }
 0x2d9   :  { %v1556_v54 = vpack.c.bf16 %v1190_v23, %v1187_v57 }
 0x2da   :  { %1577 = vst [vmem:[%s2355_s9 + $0x78] sm:$0xff] %v1561_v25  }
 0x2db   :  { %1576 = vst [vmem:[%s2355_s9 + $0x70] sm:$0xff] %v1556_v54  }

</bundles_post_ra>
